<compile_context>
chip_gen: v6e
topology: v6e:2x2x1
jax: 0.10.0
libtpu: 0.0.40
codegen_flags: <defaults>
</compile_context>

<pallas_src>
import math
import functools

import jax
import jax.numpy as jnp
from jax.experimental import pallas as pl
from jax.experimental.pallas import tpu as pltpu

# Preferred tile sizes (bf16 operands, f32 accumulator).  With 2-deep buffering the
# dense working set is ~10 MiB, well inside every generation's VMEM budget;
# _pick_tile falls back to the full dimension when the preferred tile does not
# divide it (toy shapes -> grid (1,1,1)).
TM_PREF = 512      # rows      (sublane-aligned, multiple of 8)
TN_PREF = 1024     # out cols  (lane-aligned, multiple of 128 -> unmasked vst)
TK_PREF = 1024     # reduction (lane-aligned, multiple of 128)


@functools.lru_cache(maxsize=None)
def _vmem_limit_bytes():
    """Generation-aware scoped-VMEM request: 48 MiB on 128-MiB parts (v5e/v6e),
    ~60% of physical on 64-MiB parts (v7x) to leave headroom for internal scratch."""
    cap = 128 * 1024 * 1024
    try:
        info = pltpu.get_tpu_info()
        cap = int(getattr(info, "vmem_capacity_bytes", cap) or cap)
    except Exception:
        pass
    return min(48 * 1024 * 1024, (cap * 3) // 5)


def _round_up(x, m):
    return ((x + m - 1) // m) * m


def _pick_tile(dim, preferred, align):
    """Largest `align`-multiple tile <= preferred that divides dim, else the full dim."""
    if dim <= preferred:
        return dim
    t = (preferred // align) * align
    while t >= align:
        if dim % t == 0:
            return t
        t -= align
    return dim


# ----------------------------- Pallas kernels ------------------------------

def _dense_kernel(x_ref, w_ref, b_ref, o_ref, acc_ref, *, act):
    """One (tm, tn) output tile; grid axis 2 is the K reduction."""
    @pl.when(pl.program_id(2) == 0)
    def _():
        acc_ref[...] = jnp.zeros_like(acc_ref)

    acc_ref[...] += jnp.dot(x_ref[...], w_ref[...],
                            preferred_element_type=jnp.float32)

    @pl.when(pl.program_id(2) == pl.num_programs(2) - 1)
    def _():
        y = acc_ref[...] + b_ref[...].astype(jnp.float32)
        if act == "gelu":
            # TODO(synk): torch BERT typically uses exact (erf) GELU; tanh approximation
            # is used here for guaranteed Mosaic lowering (tiny numeric drift).
            y = jax.nn.gelu(y, approximate=True)
        o_ref[...] = y.astype(o_ref.dtype)


def dense(x2d, w, b, act=None, out_dtype=jnp.bfloat16):
    """Tiled, pipelined matmul: x2d (M, K) @ w (K, N) + b, optional GELU epilogue.

    Non-128-divisible N (e.g. the MLM vocab) is zero-padded to a lane-friendly
    multiple so the kernel stays tiled instead of falling back to a full-N block
    (which would blow past v7x's 64 MiB VMEM at real vocab sizes); the pad columns
    are sliced off the output.
    """
    M, K = x2d.shape
    N = w.shape[1]

    n_align = 128 if N <= TN_PREF else TN_PREF
    N_pad = _round_up(N, n_align)
    if N_pad != N:
        w = jnp.pad(w, ((0, 0), (0, N_pad - N)))
        b = jnp.pad(b, (0, N_pad - N))

    tm = _pick_tile(M, TM_PREF, 8)
    tn = _pick_tile(N_pad, TN_PREF, 128)
    tk = _pick_tile(K, TK_PREF, 128)
    grid = (M // tm, N_pad // tn, K // tk)

    cost = pl.CostEstimate(
        flops=2 * M * N_pad * K,
        transcendentals=(M * N_pad if act == "gelu" else 0),
        bytes_accessed=2 * (M * K + K * N_pad)
        + M * N_pad * jnp.dtype(out_dtype).itemsize + 4 * N_pad,
    )

    out = pl.pallas_call(
        functools.partial(_dense_kernel, act=act),
        out_shape=jax.ShapeDtypeStruct((M, N_pad), out_dtype),
        grid=grid,
        in_specs=[
            pl.BlockSpec((tm, tk), lambda i, j, k: (i, k)),
            pl.BlockSpec((tk, tn), lambda i, j, k: (k, j)),
            pl.BlockSpec((1, tn), lambda i, j, k: (0, j)),
        ],
        out_specs=pl.BlockSpec((tm, tn), lambda i, j, k: (i, j)),
        scratch_shapes=[pltpu.VMEM((tm, tn), jnp.float32)],
        compiler_params=pltpu.CompilerParams(
            dimension_semantics=("parallel", "parallel", "arbitrary"),
            vmem_limit_bytes=_vmem_limit_bytes()),
        cost_estimate=cost,
    )(x2d.astype(jnp.bfloat16), w.astype(jnp.bfloat16),
      b.reshape(1, N_pad).astype(jnp.float32))

    if N_pad != N:
        out = out[:, :N]
    return out


def _dense_add_ln_kernel(x_ref, w_ref, b_ref, res_ref, g_ref, bt_ref,
                         o_ref, acc_ref, *, eps):
    """x @ w + b, then residual-add + LayerNorm as the epilogue (full N per tile)."""
    @pl.when(pl.program_id(1) == 0)
    def _():
        acc_ref[...] = jnp.zeros_like(acc_ref)

    acc_ref[...] += jnp.dot(x_ref[...], w_ref[...],
                            preferred_element_type=jnp.float32)

    @pl.when(pl.program_id(1) == pl.num_programs(1) - 1)
    def _():
        y = acc_ref[...] + b_ref[...].astype(jnp.float32) + res_ref[...].astype(jnp.float32)
        # Single-pass stats: var = E[y^2] - mu^2 (one fewer full (tm, N) VPU pass).
        mu = jnp.mean(y, axis=-1, keepdims=True)
        msq = jnp.mean(y * y, axis=-1, keepdims=True)
        var = jnp.maximum(msq - mu * mu, 0.0)
        yn = (y - mu) * jax.lax.rsqrt(var + eps)
        o_ref[...] = (yn * g_ref[...].astype(jnp.float32)
                      + bt_ref[...].astype(jnp.float32)).astype(o_ref.dtype)


def dense_add_ln(x2d, w, b, residual, gamma, beta, eps=1e-5, out_dtype=jnp.bfloat16):
    """Fused (x @ w + b + residual) -> LayerNorm.  N (=d_model) kept whole per tile."""
    M, K = x2d.shape
    N = w.shape[1]
    tm = _pick_tile(M, TM_PREF, 8)
    tk = _pick_tile(K, TK_PREF, 128)
    grid = (M // tm, K // tk)

    cost = pl.CostEstimate(
        flops=2 * M * N * K + 8 * M * N,
        transcendentals=M,   # rsqrt per row
        bytes_accessed=2 * (M * K + K * N + M * N) + M * N * jnp.dtype(out_dtype).itemsize,
    )

    return pl.pallas_call(
        functools.partial(_dense_add_ln_kernel, eps=eps),
        out_shape=jax.ShapeDtypeStruct((M, N), out_dtype),
        grid=grid,
        in_specs=[
            pl.BlockSpec((tm, tk), lambda i, k: (i, k)),
            pl.BlockSpec((tk, N), lambda i, k: (k, 0)),
            pl.BlockSpec((1, N), lambda i, k: (0, 0)),
            pl.BlockSpec((tm, N), lambda i, k: (i, 0)),
            pl.BlockSpec((1, N), lambda i, k: (0, 0)),
            pl.BlockSpec((1, N), lambda i, k: (0, 0)),
        ],
        out_specs=pl.BlockSpec((tm, N), lambda i, k: (i, 0)),
        scratch_shapes=[pltpu.VMEM((tm, N), jnp.float32)],
        compiler_params=pltpu.CompilerParams(
            dimension_semantics=("parallel", "arbitrary"),
            vmem_limit_bytes=_vmem_limit_bytes()),
        cost_estimate=cost,
    )(x2d.astype(jnp.bfloat16), w.astype(jnp.bfloat16), b.reshape(1, N).astype(jnp.float32),
      residual.astype(jnp.bfloat16), gamma.reshape(1, N).astype(jnp.float32),
      beta.reshape(1, N).astype(jnp.float32))


def _attn_kernel(qkv_ref, bias_ref, o_ref, *, num_heads, dh, scale, tq):
    """One (batch, q-tile) per grid step.  Heads are sliced on the lane axis inside
    the kernel (no split-heads transposes through HBM); each head's context is
    stored directly into its lane slice of the (tq, D) output block."""
    qkv = qkv_ref[0]                   # (S, 3D) bf16 (full K/V rows)
    bias = bias_ref[0]                 # (1, S)  f32 additive mask bias (0 / -1e9)
    D = num_heads * dh

    q_start = pl.multiple_of(pl.program_id(1) * tq, 8)

    # TODO(synk): dh-wide lane slices at non-128 offsets under-fill the MXU for real
    # BERT shapes (dh=64); a (B, H, S, dh) layout from the QKV matmul out_spec (or
    # head-pair batching) would tile-align them.  Kept fused-on-lanes here.
    for h in range(num_heads):         # static unroll
        # Fold the 1/sqrt(dh) scale into Q (tq*dh muls instead of tq*S).
        q = qkv[pl.ds(q_start, tq), h * dh:(h + 1) * dh] * jnp.bfloat16(scale)
        k = qkv[:, D + h * dh:D + (h + 1) * dh]
        v = qkv[:, 2 * D + h * dh:2 * D + (h + 1) * dh]
        # Contract last axes directly: no per-head XLU transpose of K.
        scores = jax.lax.dot_general(
            q, k, (((1,), (1,)), ((), ())),
            preferred_element_type=jnp.float32)                       # (tq, S) f32
        scores = scores + bias                                        # additive pad mask
        m = jnp.max(scores, axis=-1, keepdims=True)
        p = jnp.exp(scores - m)
        denom = jnp.sum(p, axis=-1, keepdims=True)
        p = p * pl.reciprocal(denom, approx=True)                     # EUP, frees VALU slots
        ctx = jnp.dot(p.astype(v.dtype), v, preferred_element_type=jnp.float32)
        o_ref[0, :, h * dh:(h + 1) * dh] = ctx.astype(o_ref.dtype)    # direct per-head store


def attention(qkv, bias_f, num_heads):
    """qkv: (B, S, 3D) bf16 (fused q|k|v); bias_f: (B, 1, S) f32 additive mask;
    returns (B, S, D) bf16.  Grid is (B, q-tiles), both axes parallel."""
    B, S, D3 = qkv.shape
    D = D3 // 3
    dh = D // num_heads
    scale = 1.0 / math.sqrt(dh)
    tq = _pick_tile(S, 256, 8)
    # TODO(synk): at large S this should also tile K/V with an online softmax
    # (flash); the full (tq, S) score tile per head is fine at these sizes.
    return pl.pallas_call(
        functools.partial(_attn_kernel, num_heads=num_heads, dh=dh, scale=scale, tq=tq),
        out_shape=jax.ShapeDtypeStruct((B, S, D), jnp.bfloat16),
        grid=(B, S // tq),
        in_specs=[
            # Full K/V rows per batch; block index constant over the q-tile axis so
            # the (S, 3D) slab is DMA'd once per batch element.
            pl.BlockSpec((1, S, D3), lambda b, qi: (b, 0, 0)),
            pl.BlockSpec((1, 1, S), lambda b, qi: (b, 0, 0)),
        ],
        out_specs=pl.BlockSpec((1, tq, D), lambda b, qi: (b, qi, 0)),
        compiler_params=pltpu.CompilerParams(
            dimension_semantics=("parallel", "parallel"),   # lets v7x shard both TCs
            vmem_limit_bytes=_vmem_limit_bytes()),
    )(qkv, bias_f)


# --------------------------- BERT encoder (glue) ----------------------------

def sinusoidal_pos_encoding(max_len, d_model):
    pos = jnp.arange(max_len, dtype=jnp.float32)[:, None]
    i = jnp.arange(d_model)[None, :]
    angle = pos / jnp.power(10000.0, (2.0 * (i // 2)).astype(jnp.float32) / d_model)
    return jnp.where(i % 2 == 0, jnp.sin(angle), jnp.cos(angle)).astype(jnp.float32)


def encoder_layer(h, bias_f, p, num_heads):
    B, S, D = h.shape
    x2d = h.reshape(B * S, D)

    # Fused QKV projection: one read of the activations, one wide-N matmul.
    # TODO(synk): on v5e the qkv/ctx HBM round-trips between pallas_calls could be
    # removed by emitting attention as a nested pipeline over the QKV output tiles.
    qkv = dense(x2d, p["wqkv"], p["bqkv"])                          # (B*S, 3D) bf16
    ctx = attention(qkv.reshape(B, S, 3 * D), bias_f, num_heads)    # (B, S, D)  bf16

    # Output projection with fused residual-add + LayerNorm epilogue.
    h1 = dense_add_ln(ctx.reshape(B * S, D), p["wo"], p["bo"],
                      x2d, p["ln1_g"], p["ln1_b"])                  # (B*S, D) bf16

    # FFN: GELU fused into the first matmul, residual+LN fused into the second.
    ff = dense(h1, p["w1"], p["b1"], act="gelu")                    # (B*S, d_ff) bf16
    h2 = dense_add_ln(ff, p["w2"], p["b2"], h1, p["ln2_g"], p["ln2_b"])
    return h2.reshape(B, S, D)


def bert_encoder(params, tokens, seg_ids, bias_f, num_heads):
    B, S = tokens.shape
    # TODO(synk): embedding gather stays in plain JAX (no clean small-scale Pallas gather).
    h = (params["tok_emb"][tokens]
         + params["seg_emb"][seg_ids]
         + params["pos_enc"][:S][None, :, :]).astype(jnp.bfloat16)
    for lp in params["layers"]:
        h = encoder_layer(h, bias_f, lp, num_heads)
    return h


def bert_mlm_nsp_forward(params, tokens, seg_ids, pad_idx=0, num_heads=4):
    """Mirrors BERT.forward: mask -> encoder -> mlm head (all tokens) -> nsp head ([CLS])."""
    B, S = tokens.shape
    # == (x != pad_idx).unsqueeze(-2), baked into an additive bias once (0 / -1e9).
    valid = (tokens != pad_idx)[:, None, :]                                # (B, 1, S)
    bias_f = jnp.where(valid, 0.0, -1e9).astype(jnp.float32)
    hidden = bert_encoder(params, tokens, seg_ids, bias_f, num_heads)      # (B, S, D) bf16
    D = hidden.shape[-1]

    mlm_logits = dense(hidden.reshape(B * S, D), params["w_mlm"], params["b_mlm"],
                       out_dtype=jnp.float32)
    mlm_logits = mlm_logits.reshape(B, S, -1)                              # (B, S, vocab)

    # NSP head: N=1 output would waste a whole Pallas launch at 1/128 lane utilisation;
    # a tiny plain-JAX matvec on the [CLS] rows is cheaper.
    cls = hidden[:, 0, :].astype(jnp.float32)                              # (B, D)
    nsp_logits = cls @ params["w_nsp"] + params["b_nsp"]                   # (B, 1)
    return mlm_logits, nsp_logits


# ------------------------------- param init --------------------------------

def init_params(key, vocab_size, d_model, n_layers, n_heads, d_ff, max_len):
    def nrm(k, shape, dtype=jnp.bfloat16):
        return (0.02 * jax.random.normal(k, shape)).astype(dtype)

    keys = jax.random.split(key, 4 + n_layers)
    params = {
        "tok_emb": nrm(keys[0], (vocab_size, d_model), jnp.float32),
        "seg_emb": nrm(keys[1], (2, d_model), jnp.float32),
        "pos_enc": sinusoidal_pos_encoding(max_len, d_model),
        "w_mlm": nrm(keys[2], (d_model, vocab_size)),
        "b_mlm": jnp.zeros((vocab_size,), jnp.float32),
        "w_nsp": nrm(keys[3], (d_model, 1), jnp.float32),
        "b_nsp": jnp.zeros((1,), jnp.float32),
        "layers": [],
    }
    for li in range(n_layers):
        lk = jax.random.split(keys[4 + li], 6)
        wq = nrm(lk[0], (d_model, d_model))
        wk = nrm(lk[1], (d_model, d_model))
        wv = nrm(lk[2], (d_model, d_model))
        params["layers"].append({
            # fused QKV weight: one (D, 3D) matmul instead of three (D, D) ones
            "wqkv": jnp.concatenate([wq, wk, wv], axis=1),
            "bqkv": jnp.zeros((3 * d_model,), jnp.float32),
            "wo": nrm(lk[3], (d_model, d_model)), "bo": jnp.zeros((d_model,), jnp.float32),
            "ln1_g": jnp.ones((d_model,), jnp.float32), "ln1_b": jnp.zeros((d_model,), jnp.float32),
            "w1": nrm(lk[4], (d_model, d_ff)), "b1": jnp.zeros((d_ff,), jnp.float32),
            "w2": nrm(lk[5], (d_ff, d_model)), "b2": jnp.zeros((d_model,), jnp.float32),
            "ln2_g": jnp.ones((d_model,), jnp.float32), "ln2_b": jnp.zeros((d_model,), jnp.float32),
        })
    return params


# ---------------------------------- main ------------------------------------

if __name__ == "__main__":
    B, S = 2, 8
    vocab_size, d_model, n_layers, n_heads, d_ff = 100, 32, 2, 4, 64
    pad_idx = 0

    key = jax.random.PRNGKey(0)
    k_par, k_tok = jax.random.split(key)
    params = init_params(k_par, vocab_size, d_model, n_layers, n_heads, d_ff, max_len=64)

    tokens = jax.random.randint(k_tok, (B, S), 1, vocab_size, dtype=jnp.int32)
    tokens = tokens.at[0, -2:].set(pad_idx)      # exercise the padding mask
    tokens = tokens.at[1, -1:].set(pad_idx)
    seg_ids = jnp.concatenate(
        [jnp.zeros((B, S // 2), jnp.int32), jnp.ones((B, S - S // 2), jnp.int32)], axis=1)

    mlm_logits, nsp_logits = bert_mlm_nsp_forward(
        params, tokens, seg_ids, pad_idx=pad_idx, num_heads=n_heads)
    jax.block_until_ready((mlm_logits, nsp_logits))

    assert mlm_logits.shape == (B, S, vocab_size)
    assert nsp_logits.shape == (B, 1)
    assert bool(jnp.all(jnp.isfinite(mlm_logits))) and bool(jnp.all(jnp.isfinite(nsp_logits)))
    print("KERNEL_OK")
</pallas_src>

<mosaic_0001>
module attributes {stable_mosaic.version = 11 : i64} {
  func.func @_dense_kernel(%arg0: i32, %arg1: i32, %arg2: i32, %arg3: memref<16x32xbf16, #tpu.memory_space<vmem>>, %arg4: memref<32x128xbf16, #tpu.memory_space<vmem>>, %arg5: memref<1x128xf32, #tpu.memory_space<vmem>>, %arg6: memref<16x128xbf16, #tpu.memory_space<vmem>>, %arg7: memref<16x128xf32, #tpu.memory_space<vmem>>) attributes {dimension_semantics = [#tpu.dimension_semantics<parallel>, #tpu.dimension_semantics<parallel>, #tpu.dimension_semantics<arbitrary>], iteration_bounds = array<i64: 1, 1, 1>, scalar_prefetch = 0 : i64, scratch_operands = 1 : i64, tpu.core_type = #tpu.core_type<tc>, window_params = [{transform_indices = @transform_0, window_bounds = array<i64: 16, 32>}, {transform_indices = @transform_1, window_bounds = array<i64: 32, 128>}, {transform_indices = @transform_2, window_bounds = array<i64: 1, 128>}, {transform_indices = @transform_3, window_bounds = array<i64: 16, 128>}]} {
    %c0_i32 = arith.constant 0 : i32
    %0 = arith.cmpi eq, %arg2, %c0_i32 : i32
    %1 = arith.extui %0 : i1 to i32
    %c0_i32_0 = arith.constant 0 : i32
    %2 = arith.cmpi ne, %1, %c0_i32_0 : i32
    scf.if %2 {
      %cst_10 = arith.constant 0.000000e+00 : f32
      %12 = vector.broadcast %cst_10 : f32 to vector<16x128xf32>
      %c0_11 = arith.constant 0 : index
      %c0_12 = arith.constant 0 : index
      %13 = vector.load %arg7[%c0_11, %c0_12] : memref<16x128xf32, #tpu.memory_space<vmem>>, vector<16x128xf32>
      tpu.vector_store %arg7[%c0_11, %c0_12], %12 {strides = array<i32>} : memref<16x128xf32, #tpu.memory_space<vmem>>, vector<16x128xf32>,
    } else {
    }
    %c0 = arith.constant 0 : index
    %c0_1 = arith.constant 0 : index
    %3 = vector.load %arg7[%c0, %c0_1] : memref<16x128xf32, #tpu.memory_space<vmem>>, vector<16x128xf32>
    %c0_2 = arith.constant 0 : index
    %c0_3 = arith.constant 0 : index
    %4 = vector.load %arg3[%c0_2, %c0_3] : memref<16x32xbf16, #tpu.memory_space<vmem>>, vector<16x32xbf16>
    %c0_4 = arith.constant 0 : index
    %c0_5 = arith.constant 0 : index
    %5 = vector.load %arg4[%c0_4, %c0_5] : memref<32x128xbf16, #tpu.memory_space<vmem>>, vector<32x128xbf16>
    %cst = arith.constant dense<0.000000e+00> : vector<16x128xf32>
    %6 = tpu.matmul %4, %5, %cst {dimension_numbers = #tpu.dot_dimension_numbers<[1], [0], [0], [1], [0, 0, 1, 1], [], []>} : vector<16x32xbf16>, vector<32x128xbf16>, vector<16x128xf32> -> vector<16x128xf32>
    %7 = arith.addf %3, %6 : vector<16x128xf32>
    %c0_6 = arith.constant 0 : index
    %c0_7 = arith.constant 0 : index
    %8 = vector.load %arg7[%c0_6, %c0_7] : memref<16x128xf32, #tpu.memory_space<vmem>>, vector<16x128xf32>
    tpu.vector_store %arg7[%c0_6, %c0_7], %7 {strides = array<i32>} : memref<16x128xf32, #tpu.memory_space<vmem>>, vector<16x128xf32>,
    %c0_i32_8 = arith.constant 0 : i32
    %9 = arith.cmpi eq, %arg2, %c0_i32_8 : i32
    %10 = arith.extui %9 : i1 to i32
    %c0_i32_9 = arith.constant 0 : i32
    %11 = arith.cmpi ne, %10, %c0_i32_9 : i32
    scf.if %11 {
      %c0_10 = arith.constant 0 : index
      %c0_11 = arith.constant 0 : index
      %12 = vector.load %arg7[%c0_10, %c0_11] : memref<16x128xf32, #tpu.memory_space<vmem>>, vector<16x128xf32>
      %c0_12 = arith.constant 0 : index
      %c0_13 = arith.constant 0 : index
      %13 = vector.load %arg5[%c0_12, %c0_13] : memref<1x128xf32, #tpu.memory_space<vmem>>, vector<1x128xf32>
      %14 = vector.broadcast %13 : vector<1x128xf32> to vector<16x128xf32>
      %15 = arith.addf %12, %14 : vector<16x128xf32>
      %16 = arith.truncf %15 : vector<16x128xf32> to vector<16x128xbf16>
      %c0_14 = arith.constant 0 : index
      %c0_15 = arith.constant 0 : index
      %17 = vector.load %arg6[%c0_14, %c0_15] : memref<16x128xbf16, #tpu.memory_space<vmem>>, vector<16x128xbf16>
      tpu.vector_store %arg6[%c0_14, %c0_15], %16 {strides = array<i32>} : memref<16x128xbf16, #tpu.memory_space<vmem>>, vector<16x128xbf16>,
    } else {
    }
    return
  }
  func.func @transform_0(%arg0: i32, %arg1: i32, %arg2: i32) -> (i32, i32) {
    %c0_i32 = arith.constant 0 : i32
    return %arg0, %arg2 : i32, i32
  }
  func.func @transform_1(%arg0: i32, %arg1: i32, %arg2: i32) -> (i32, i32) {
    %c0_i32 = arith.constant 0 : i32
    return %arg2, %arg1 : i32, i32
  }
  func.func @transform_2(%arg0: i32, %arg1: i32, %arg2: i32) -> (i32, i32) {
    %c0_i32 = arith.constant 0 : i32
    %c0_i32_0 = arith.constant 0 : i32
    return %c0_i32, %arg1 : i32, i32
  }
  func.func @transform_3(%arg0: i32, %arg1: i32, %arg2: i32) -> (i32, i32) {
    %c0_i32 = arith.constant 0 : i32
    return %arg0, %arg1 : i32, i32
  }
}

</mosaic_0001>

<bundles_post_ra>
// kernel: tpu_custom_call.1
= control target key start
LH: loop header
LB: loop body
LE: loop exit
PB: predicated region body
PF: predicated region fallthrough
CT: control target
= control target key end

     0   :  { %8 = vsyncpa [#allocation4], 0  ;;  %s315_s0 = inlined_call_operand.hbm [shape: bf16[16,32], index: 0, kind: input, shape index: {}]   ;;  %s316_s1 = inlined_call_operand.hbm [shape: bf16[32,128], index: 1, kind: input, shape index: {}]   ;;  %s317_s2 = inlined_call_operand.vmem [shape: f32[1,128], index: 2, kind: input, shape index: {}]   ;;  %s318_s3 = inlined_call_operand.hbm [shape: bf16[16,128], index: 3, kind: output, shape index: {}]  }
   0x1   :  { %9 = vsyncpa [#allocation7], 0 }
   0x2   :  { %10 = vsyncpa [#allocation5], 0  ;;  %s267_s12 = smov [#allocation3]  }
   0x3   :  { %s16_s13 = sshll.u32 %s267_s12, 4  ;;  %s17_s13 = int_to_ptr.vmem [resolvable:$true] %s16_s13 }
   0x4   :  { %s209_s14 = scalar_lea.vmem %s17_s13, 128  ;;  %p214_p1 = scmp.lt.s32.totalorder %s17_s13, %s17_s13 }
   0x5   :  { %p210_p0 = scmp.ne.s32.totalorder %s17_s13, %s209_s14  ;;  %p215_p2 = scmp.lt.s32.totalorder %s209_s14, %s209_s14 }
   0x7   :  { %p216_p3 = por %p215_p2, %p214_p1 }
   0x9   :  { %p217_p4 = pnand %p216_p3, %p210_p0 }
   0xb   :  { %220 = shalt.err (!%p217_p4)
}
   0xc   :  { %s268_s15 = smov 64   ;;  %s269_s16 = smov 4  }
   0xd   :  { %22 = dma.hbm_to_vmem [thread:$0]  %s315_s0, 128, %s17_s13, [#allocation4], %s268_s15, %s268_s15, %s269_s16  }
   0xe   :  { %s270_s19 = smov [#allocation6]  }
   0xf   :  { %s28_s20 = sshll.u32 %s270_s19, 4  ;;  %s29_s20 = int_to_ptr.vmem [resolvable:$true] %s28_s20 }
  0x10   :  { %s229_s21 = scalar_lea.vmem %s29_s20, 256  ;;  %p234_p6 = scmp.lt.s32.totalorder %s29_s20, %s29_s20 }
  0x11   :  { %p230_p5 = scmp.ne.s32.totalorder %s29_s20, %s229_s21  ;;  %p235_p7 = scmp.lt.s32.totalorder %s229_s21, %s229_s21 }
  0x13   :  { %p236_p8 = por %p235_p7, %p234_p6 }
  0x15   :  { %p237_p9 = pnand %p236_p8, %p230_p5 }
  0x17   :  { %240 = shalt.err (!%p237_p9)
}
  0x18   :  { %34 = dma.hbm_to_vmem [thread:$0]  %s316_s1, 256, %s29_s20, [#allocation7], %s268_s15, %s268_s15, %s269_s16  }
  0x19   :  { %261 = dma.done.wait [#allocation4], 128  }
  0x1a   :  { %262 = vsyncadd [#allocation4], 4294967168 }
  0x1b   :  { %263 = dma.done.wait [#allocation7], 256  }
  0x1c   :  { %264 = vsyncadd [#allocation7], 4294967040  ;;  %v271_v0 = vmov 0.0   ;;  %vm272_vm0 = vmmov 0   ;;  %v198_v1 = vld [vmem:[#allocation6 + $0x8] sm:$0xff]   ;;  %v199_v2 = vld [vmem:[#allocation6] sm:$0xff]  }
  0x1d   :  { %183 = vmatprep.subr.bf16.mxu0 %v271_v0  ;;  %187 = vmatprep.mubr.msk.bf16.mxu0 %vm272_vm0, %v271_v0  ;;  %v200_v3 = vld [vmem:[#allocation3] sm:$0xff]   ;;  %vm75_vm1 = vcmask 261120   ;;  %s273_s1 = smov [#allocation8]  }
  0x1e   :  { %184 = vmatpush3.bf16.msra.mxu0 %v198_v1  ;;  %v170_v5 = vld [vmem:[%s317_s2] ss:$0 sm:$0xff]  ;;  %s153_s25 = sshll.u32 %s273_s1, 4  ;;  %s154_s25 = int_to_ptr.vmem [resolvable:$true] %s153_s25 }
  0x1f   :  { %185 = vmatprep.subr.bf16.mxu0 %v271_v0  ;;  %s241_s26 = scalar_lea.vmem %s154_s25, 128  ;;  %p246_p11 = scmp.lt.s32.totalorder %s154_s25, %s154_s25 }
  0x20   :  { %p242_p10 = scmp.ne.s32.totalorder %s154_s25, %s241_s26  ;;  %p247_p12 = scmp.lt.s32.totalorder %s241_s26, %s241_s26 }
  0x22   :  { %186 = vmatpush3.bf16.msra.mxu0 %v199_v2  ;;  %p248_p13 = por %p247_p12, %p246_p11 }
  0x24   :  { %p249_p0 = pnand %p248_p13, %p242_p10 }
  0x25   :  { %188 = vmatmul.mubr.msk.bf16.vlgmr.msra.gmra.mxu0 %vm75_vm1, %v200_v3 }
  0xe5   :  { %v113_v4 = vpop.f32.mrf.mxu0 }
  0xe6   :  { %v136_v8 = vadd.f32 %v170_v5, %v113_v4 }
  0xe7   :  { %v189_v6 = vpop.f32.mrf.mxu0 }
  0xe9   :  { %v116_v7 = vpop.f32.mrf.mxu0 }
  0xea   :  { %v137_v9 = vadd.f32 %v170_v5, %v116_v7 }
  0xeb   :  { %v190_v10 = vpop.f32.mrf.mxu0 }
  0xec   :  { %v178_v11 = vpack.c.bf16 %v137_v9, %v136_v8 }
  0xee   :  { %179 = vst [vmem:[#allocation8] sm:$0xff] %v178_v11  }
  0xef   :  { %252 = shalt.err (!%p249_p0)
}
  0xf0   :  { %159 = dma.vmem_to_hbm [thread:$0]  %s154_s25, 128, %s318_s3, [#allocation5], %s268_s15, %s268_s15, %s269_s16  }
  0xf1   :  { %265 = dma.done.wait [#allocation5], 128  }
  0xf2   :  { %266 = vsyncadd [#allocation5], 4294967168 }
  0xf3   :  { %163 = vsyncpa [#allocation4], 1 }
  0xf4   :  { %164 = vsyncpa [#allocation7], 1 }
  0xf5   :  { %165 = vsyncpa [#allocation5], 1 }

</bundles_post_ra>
